<compile_context>
chip_gen: v7x
topology: tpu7x:2x2x1
jax: 0.10.0
libtpu: 0.0.40
codegen_flags: <defaults>
</compile_context>

<pallas_src>
import functools

import jax
import jax.numpy as jnp
from jax import lax
from jax.experimental import pallas as pl
from jax.experimental.pallas import tpu as pltpu


def _deepset_kernel(d_ref,       # (TB, N, D)   dot_dtype   (D = Dx + Dy)
                    cs_ref,      # (TB, 1)      int32, clamped to [0, N_orig]
                    w1_ref,      # (D,  H)      dot_dtype
                    b1_ref,      # (1,  H)      f32
                    w2_ref,      # (H,  H)      dot_dtype
                    b2_ref,      # (1,  H)      f32
                    w3_ref,      # (H,  Lp)     dot_dtype  (latent padded to 128)
                    b3_ref,      # (1,  Lp)     f32
                    out_ref,     # (TB, Lp)     f32
                    *, dot_dtype):
    TB, N, D = d_ref.shape
    Lp = out_ref.shape[-1]

    # --- phi MLP on all TB*N set elements at once (one big MXU M dim) -------
    d = d_ref[...].reshape(TB * N, D)
    h = jnp.dot(d, w1_ref[...], preferred_element_type=jnp.float32) + b1_ref[...]
    h = jnp.maximum(h, 0.0)                                    # ReLU in f32
    h = jnp.dot(h.astype(dot_dtype), w2_ref[...],
                preferred_element_type=jnp.float32) + b2_ref[...]
    h = jnp.maximum(h, 0.0)
    ri = jnp.dot(h.astype(dot_dtype), w3_ref[...],
                 preferred_element_type=jnp.float32) + b3_ref[...]   # (TB*N, Lp)

    # --- masked mean pooling over the set axis ------------------------------
    # VPU mask + XLU sublane sum: pooling cost is linear in TB*N (no TB^2 dot).
    ri = ri.reshape(TB, N, Lp)
    cs = cs_ref[...]                                                  # (TB, 1)
    pos = lax.broadcasted_iota(jnp.int32, (TB, N, Lp), 1)
    mask = pos < cs.reshape(TB, 1, 1)
    pooled = jnp.sum(jnp.where(mask, ri, 0.0), axis=1)                # (TB, Lp)

    # Clamp denominator to >= 1: cs == 0 yields 0 (torch would give NaN).
    denom = jnp.maximum(cs, 1).astype(jnp.float32)                    # (TB, 1)
    out_ref[...] = pooled * pl.reciprocal(denom, approx=False)


def _choose_tb(batch, n_pad, *, target_rows=2048):
    """Batch elements per grid step.

    Targets TB*N_pad ~= target_rows MXU rows per step (~1 MiB lane-padded input
    block, amortising the ~0.35us per-step overhead), keeps TB sublane-aligned,
    and keeps >= 2 grid steps whenever the batch allows it so the "parallel"
    grid axis can shard across v7x's two TensorCores."""
    batch = int(batch)
    n_pad = max(int(n_pad), 1)
    if batch <= 8:
        return batch
    tb = max(1, target_rows // n_pad)
    tb = min(tb, pl.cdiv(batch, 2))        # keep >= 2 grid steps (v7x megacore)
    tb = 8 * pl.cdiv(tb, 8)                # sublane-aligned batch tile
    tb = min(tb, 8 * pl.cdiv(batch, 8))
    return int(max(tb, 8))


def deepset_forward(x_context, y_context, params, context_sizes=None,
                    *, dot_dtype=jnp.bfloat16):
    """DeepSet.forward: concat -> phi (MLP) -> masked mean pooling over dim -2.

    dot_dtype controls the MXU operand dtype (bf16 default on v5e/v6e/v7x;
    accumulation / bias / ReLU / pooling stay f32).  Pass jnp.float32 for a
    1e-5-accurate match to the f32 reference."""
    w1, b1, w2, b2, w3, b3 = params
    B, N, Dx = x_context.shape
    Dy = y_context.shape[-1]
    D = Dx + Dy
    H = w1.shape[1]
    L = w3.shape[1]

    cd = jnp.dtype(dot_dtype)
    if cd.itemsize not in (1, 2, 4):
        raise ValueError(f"unsupported dot_dtype: {dot_dtype}")

    # Per-batch context sizes, clamped to [0, N] (cs > N behaves like torch's
    # h_i[:cs] slicing, i.e. mean over all N rows).
    if context_sizes is None:
        cs = jnp.full((B, 1), N, dtype=jnp.int32)
    else:
        cs = jnp.clip(jnp.asarray(context_sizes, jnp.int32).reshape(B, 1), 0, N)

    # Sublane tile of dot_dtype (f32: 8, bf16: 16, int8/fp8: 32): pad the set
    # axis so the in-kernel (TB, N, D) -> (TB*N, D) collapse is layout-free.
    sub = 8 * (4 // cd.itemsize)
    N_pad = sub * pl.cdiv(N, sub)

    # Batch tiling (and batch padding to a multiple of TB).
    TB = _choose_tb(B, N_pad)
    nb = pl.cdiv(B, TB)
    B_pad = nb * TB

    # Single concatenated input; cast to dot_dtype once, padding fused in.
    d_in = jnp.concatenate([x_context.astype(cd), y_context.astype(cd)], axis=-1)
    d_in = jnp.pad(d_in, ((0, B_pad - B), (0, N_pad - N), (0, 0)))
    cs_p = jnp.pad(cs, ((0, B_pad - B), (0, 0)))      # padded batch rows: cs = 0

    # Pad latent dim to a full 128-lane multiple: unmasked output stores, and
    # it costs nothing (ri / layer-3 matmul are lane-padded to 128 anyway).
    Lp = 128 * pl.cdiv(L, 128)
    w3p = jnp.pad(w3, ((0, 0), (0, Lp - L))).astype(cd)
    b3p = jnp.pad(b3, ((0, 0), (0, Lp - L))).astype(jnp.float32)

    w1c = w1.astype(cd)
    w2c = w2.astype(cd)
    b1f = b1.astype(jnp.float32)
    b2f = b2.astype(jnp.float32)

    kernel = functools.partial(_deepset_kernel, dot_dtype=cd)

    # Advisory cost: 2*M*K*N per matmul layer + elementwise pooling.
    flops = 2 * B_pad * N_pad * (D * H + H * H + H * Lp) + 2 * B_pad * N_pad * Lp
    bytes_accessed = (d_in.size * cd.itemsize
                      + (w1c.size + w2c.size + w3p.size) * cd.itemsize
                      + (b1f.size + b2f.size + b3p.size) * 4
                      + cs_p.size * 4 + B_pad * Lp * 4)
    cost = pl.CostEstimate(flops=int(flops), transcendentals=0,
                           bytes_accessed=int(bytes_accessed))

    out = pl.pallas_call(
        kernel,
        out_shape=jax.ShapeDtypeStruct((B_pad, Lp), jnp.float32),
        grid=(nb,),
        in_specs=[
            pl.BlockSpec((TB, N_pad, D), lambda i: (i, 0, 0)),
            pl.BlockSpec((TB, 1), lambda i: (i, 0)),
            pl.BlockSpec((D, H), lambda i: (0, 0)),
            pl.BlockSpec((1, H), lambda i: (0, 0)),
            pl.BlockSpec((H, H), lambda i: (0, 0)),
            pl.BlockSpec((1, H), lambda i: (0, 0)),
            pl.BlockSpec((H, Lp), lambda i: (0, 0)),
            pl.BlockSpec((1, Lp), lambda i: (0, 0)),
        ],
        out_specs=pl.BlockSpec((TB, Lp), lambda i: (i, 0)),
        compiler_params=pltpu.CompilerParams(
            dimension_semantics=("parallel",)),
        cost_estimate=cost,
    )(d_in, cs_p, w1c, b1f, w2c, b2f, w3p, b3p)

    return out[:B, :L]


def init_params(key, input_dim, output_dim, latent_dim, hidden_size_factor=2):
    """Deterministic synthetic init of the phi MLP parameters."""
    din = input_dim + output_dim
    hidden = max(32, hidden_size_factor * latent_dim)
    k1, k2, k3 = jax.random.split(key, 3)
    w1 = jax.random.normal(k1, (din, hidden), jnp.float32) * 0.1
    b1 = jnp.zeros((1, hidden), jnp.float32)
    w2 = jax.random.normal(k2, (hidden, hidden), jnp.float32) * 0.1
    b2 = jnp.zeros((1, hidden), jnp.float32)
    w3 = jax.random.normal(k3, (hidden, latent_dim), jnp.float32) * 0.1
    b3 = jnp.zeros((1, latent_dim), jnp.float32)
    return (w1, b1, w2, b2, w3, b3)


def _reference(x_context, y_context, params, context_sizes=None):
    """Plain-JAX reference of DeepSet.forward for verification."""
    w1, b1, w2, b2, w3, b3 = params
    d_in = jnp.concatenate([x_context, y_context], axis=-1)
    h = jnp.maximum(d_in @ w1 + b1, 0.0)
    h = jnp.maximum(h @ w2 + b2, 0.0)
    ri = h @ w3 + b3                                  # (B, N, L)
    B, N, _ = ri.shape
    if context_sizes is None:
        return jnp.mean(ri, axis=-2)
    outs = []
    for i in range(B):
        outs.append(jnp.mean(ri[i, :context_sizes[i]], axis=0))
    return jnp.stack(outs, axis=0)


if __name__ == "__main__":
    key = jax.random.PRNGKey(0)
    kx, ky, kp, kx2, ky2 = jax.random.split(key, 5)

    # --- small config consistent with the module ----------------------------
    B, N = 2, 8
    input_dim, output_dim, latent_dim = 3, 2, 16
    x_context = jax.random.normal(kx, (B, N, input_dim), jnp.float32)
    y_context = jax.random.normal(ky, (B, N, output_dim), jnp.float32)
    params = init_params(kp, input_dim, output_dim, latent_dim)
    context_sizes = [5, 8]   # per-batch number of valid context points

    r_ref = _reference(x_context, y_context, params, context_sizes)

    # default bf16 MXU path (recommended on v5e/v6e/v7x) — loose tolerance.
    r_bf16 = deepset_forward(x_context, y_context, params, context_sizes)
    jax.block_until_ready(r_bf16)
    assert jnp.allclose(r_bf16, r_ref, atol=5e-2, rtol=5e-2), "mismatch (bf16)"

    # f32 path — bit-accurate check of the masked-mean semantics.
    r_f32 = deepset_forward(x_context, y_context, params, context_sizes,
                            dot_dtype=jnp.float32)
    jax.block_until_ready(r_f32)
    assert jnp.allclose(r_f32, r_ref, atol=1e-5, rtol=1e-5), "mismatch (f32 masked mean)"

    # context_sizes=None path (plain mean over dim -2), f32.
    r_full = deepset_forward(x_context, y_context, params, None,
                             dot_dtype=jnp.float32)
    jax.block_until_ready(r_full)
    r_full_ref = _reference(x_context, y_context, params, None)
    assert jnp.allclose(r_full, r_full_ref, atol=1e-5, rtol=1e-5), "mismatch (full mean)"

    # --- larger batch: exercises batch tiling (grid > 1) and batch padding --
    B2, N2 = 24, 16
    xc2 = jax.random.normal(kx2, (B2, N2, input_dim), jnp.float32)
    yc2 = jax.random.normal(ky2, (B2, N2, output_dim), jnp.float32)
    cs2 = [(7 * i) % N2 + 1 for i in range(B2)]
    r4_ref = _reference(xc2, yc2, params, cs2)

    r4_f32 = deepset_forward(xc2, yc2, params, cs2, dot_dtype=jnp.float32)
    jax.block_until_ready(r4_f32)
    assert jnp.allclose(r4_f32, r4_ref, atol=1e-5, rtol=1e-5), "mismatch (tiled batch f32)"

    r4_bf16 = deepset_forward(xc2, yc2, params, cs2)
    jax.block_until_ready(r4_bf16)
    assert jnp.allclose(r4_bf16, r4_ref, atol=5e-2, rtol=5e-2), "mismatch (tiled batch bf16)"

    print("KERNEL_OK")
</pallas_src>

<mosaic_0001>
module attributes {stable_mosaic.version = 11 : i64} {
  func.func @_deepset_kernel(%arg0: i32, %arg1: memref<2x16x5xbf16, #tpu.memory_space<vmem>>, %arg2: memref<2x1xi32, #tpu.memory_space<vmem>>, %arg3: memref<5x32xbf16, #tpu.memory_space<vmem>>, %arg4: memref<1x32xf32, #tpu.memory_space<vmem>>, %arg5: memref<32x32xbf16, #tpu.memory_space<vmem>>, %arg6: memref<1x32xf32, #tpu.memory_space<vmem>>, %arg7: memref<32x128xbf16, #tpu.memory_space<vmem>>, %arg8: memref<1x128xf32, #tpu.memory_space<vmem>>, %arg9: memref<2x128xf32, #tpu.memory_space<vmem>>) attributes {dimension_semantics = [#tpu.dimension_semantics<parallel>], iteration_bounds = array<i64: 1>, scalar_prefetch = 0 : i64, scratch_operands = 0 : i64, tpu.core_type = #tpu.core_type<tc>, window_params = [{transform_indices = @transform_0, window_bounds = array<i64: 2, 16, 5>}, {transform_indices = @transform_1, window_bounds = array<i64: 2, 1>}, {pipeline_mode = #tpu.pipeline_mode<synchronous>, transform_indices = @transform_2, window_bounds = array<i64: 5, 32>}, {pipeline_mode = #tpu.pipeline_mode<synchronous>, transform_indices = @transform_3, window_bounds = array<i64: 1, 32>}, {pipeline_mode = #tpu.pipeline_mode<synchronous>, transform_indices = @transform_4, window_bounds = array<i64: 32, 32>}, {pipeline_mode = #tpu.pipeline_mode<synchronous>, transform_indices = @transform_5, window_bounds = array<i64: 1, 32>}, {pipeline_mode = #tpu.pipeline_mode<synchronous>, transform_indices = @transform_6, window_bounds = array<i64: 32, 128>}, {pipeline_mode = #tpu.pipeline_mode<synchronous>, transform_indices = @transform_7, window_bounds = array<i64: 1, 128>}, {transform_indices = @transform_8, window_bounds = array<i64: 2, 128>}]} {
    %c0 = arith.constant 0 : index
    %c0_0 = arith.constant 0 : index
    %c0_1 = arith.constant 0 : index
    %0 = vector.load %arg1[%c0, %c0_0, %c0_1] : memref<2x16x5xbf16, #tpu.memory_space<vmem>>, vector<2x16x5xbf16>
    %1 = vector.shape_cast %0 : vector<2x16x5xbf16> to vector<32x5xbf16>
    %c0_2 = arith.constant 0 : index
    %c0_3 = arith.constant 0 : index
    %2 = vector.load %arg3[%c0_2, %c0_3] : memref<5x32xbf16, #tpu.memory_space<vmem>>, vector<5x32xbf16>
    %cst = arith.constant dense<0.000000e+00> : vector<32x32xf32>
    %3 = tpu.matmul %1, %2, %cst {dimension_numbers = #tpu.dot_dimension_numbers<[1], [0], [0], [1], [0, 0, 1, 1], [], []>} : vector<32x5xbf16>, vector<5x32xbf16>, vector<32x32xf32> -> vector<32x32xf32>
    %c0_4 = arith.constant 0 : index
    %c0_5 = arith.constant 0 : index
    %4 = vector.load %arg4[%c0_4, %c0_5] : memref<1x32xf32, #tpu.memory_space<vmem>>, vector<1x32xf32>
    %5 = vector.broadcast %4 : vector<1x32xf32> to vector<32x32xf32>
    %6 = arith.addf %3, %5 : vector<32x32xf32>
    %cst_6 = arith.constant 0.000000e+00 : f32
    %7 = vector.broadcast %cst_6 : f32 to vector<32x32xf32>
    %8 = arith.maximumf %6, %7 : vector<32x32xf32>
    %9 = arith.truncf %8 : vector<32x32xf32> to vector<32x32xbf16>
    %c0_7 = arith.constant 0 : index
    %c0_8 = arith.constant 0 : index
    %10 = vector.load %arg5[%c0_7, %c0_8] : memref<32x32xbf16, #tpu.memory_space<vmem>>, vector<32x32xbf16>
    %cst_9 = arith.constant dense<0.000000e+00> : vector<32x32xf32>
    %11 = tpu.matmul %9, %10, %cst_9 {dimension_numbers = #tpu.dot_dimension_numbers<[1], [0], [0], [1], [0, 0, 1, 1], [], []>} : vector<32x32xbf16>, vector<32x32xbf16>, vector<32x32xf32> -> vector<32x32xf32>
    %c0_10 = arith.constant 0 : index
    %c0_11 = arith.constant 0 : index
    %12 = vector.load %arg6[%c0_10, %c0_11] : memref<1x32xf32, #tpu.memory_space<vmem>>, vector<1x32xf32>
    %13 = vector.broadcast %12 : vector<1x32xf32> to vector<32x32xf32>
    %14 = arith.addf %11, %13 : vector<32x32xf32>
    %cst_12 = arith.constant 0.000000e+00 : f32
    %15 = vector.broadcast %cst_12 : f32 to vector<32x32xf32>
    %16 = arith.maximumf %14, %15 : vector<32x32xf32>
    %17 = arith.truncf %16 : vector<32x32xf32> to vector<32x32xbf16>
    %c0_13 = arith.constant 0 : index
    %c0_14 = arith.constant 0 : index
    %18 = vector.load %arg7[%c0_13, %c0_14] : memref<32x128xbf16, #tpu.memory_space<vmem>>, vector<32x128xbf16>
    %cst_15 = arith.constant dense<0.000000e+00> : vector<32x128xf32>
    %19 = tpu.matmul %17, %18, %cst_15 {dimension_numbers = #tpu.dot_dimension_numbers<[1], [0], [0], [1], [0, 0, 1, 1], [], []>} : vector<32x32xbf16>, vector<32x128xbf16>, vector<32x128xf32> -> vector<32x128xf32>
    %c0_16 = arith.constant 0 : index
    %c0_17 = arith.constant 0 : index
    %20 = vector.load %arg8[%c0_16, %c0_17] : memref<1x128xf32, #tpu.memory_space<vmem>>, vector<1x128xf32>
    %21 = vector.broadcast %20 : vector<1x128xf32> to vector<32x128xf32>
    %22 = arith.addf %19, %21 : vector<32x128xf32>
    %23 = vector.shape_cast %22 : vector<32x128xf32> to vector<2x16x128xf32>
    %c0_18 = arith.constant 0 : index
    %c0_19 = arith.constant 0 : index
    %24 = vector.load %arg2[%c0_18, %c0_19] : memref<2x1xi32, #tpu.memory_space<vmem>>, vector<2x1xi32>
    %25 = tpu.iota {dimensions = array<i32: 1>} : vector<2x16x128xi32>
    %26 = vector.shape_cast %24 : vector<2x1xi32> to vector<2x1x1xi32>
    %27 = vector.broadcast %26 : vector<2x1x1xi32> to vector<2x16x128xi32>
    %28 = arith.cmpi slt, %25, %27 : vector<2x16x128xi32>
    %cst_20 = arith.constant 0.000000e+00 : f32
    %29 = vector.broadcast %cst_20 : f32 to vector<2x16x128xf32>
    %30 = arith.select %28, %23, %29 : vector<2x16x128xi1>, vector<2x16x128xf32>
    %cst_21 = arith.constant dense<0.000000e+00> : vector<2x128xf32>
    %31 = vector.multi_reduction <add>, %30, %cst_21 [1] : vector<2x16x128xf32> to vector<2x128xf32>
    %c1_i32 = arith.constant 1 : i32
    %32 = vector.broadcast %c1_i32 : i32 to vector<2x1xi32>
    %33 = arith.maxsi %24, %32 : vector<2x1xi32>
    %34 = arith.sitofp %33 : vector<2x1xi32> to vector<2x1xf32>
    %35 = tpu.reciprocal %34 : vector<2x1xf32> -> vector<2x1xf32>
    %36 = vector.broadcast %35 : vector<2x1xf32> to vector<2x128xf32>
    %37 = arith.mulf %31, %36 : vector<2x128xf32>
    %c0_22 = arith.constant 0 : index
    %c0_23 = arith.constant 0 : index
    %38 = vector.load %arg9[%c0_22, %c0_23] : memref<2x128xf32, #tpu.memory_space<vmem>>, vector<2x128xf32>
    tpu.vector_store %arg9[%c0_22, %c0_23], %37 {strides = array<i32>} : memref<2x128xf32, #tpu.memory_space<vmem>>, vector<2x128xf32>,
    return
  }
  func.func @transform_0(%arg0: i32) -> (i32, i32, i32) {
    %c0_i32 = arith.constant 0 : i32
    %c0_i32_0 = arith.constant 0 : i32
    %c0_i32_1 = arith.constant 0 : i32
    return %arg0, %c0_i32, %c0_i32_0 : i32, i32, i32
  }
  func.func @transform_1(%arg0: i32) -> (i32, i32) {
    %c0_i32 = arith.constant 0 : i32
    %c0_i32_0 = arith.constant 0 : i32
    return %arg0, %c0_i32 : i32, i32
  }
  func.func @transform_2(%arg0: i32) -> (i32, i32) {
    %c0_i32 = arith.constant 0 : i32
    %c0_i32_0 = arith.constant 0 : i32
    %c0_i32_1 = arith.constant 0 : i32
    return %c0_i32, %c0_i32_0 : i32, i32
  }
  func.func @transform_3(%arg0: i32) -> (i32, i32) {
    %c0_i32 = arith.constant 0 : i32
    %c0_i32_0 = arith.constant 0 : i32
    %c0_i32_1 = arith.constant 0 : i32
    return %c0_i32, %c0_i32_0 : i32, i32
  }
  func.func @transform_4(%arg0: i32) -> (i32, i32) {
    %c0_i32 = arith.constant 0 : i32
    %c0_i32_0 = arith.constant 0 : i32
    %c0_i32_1 = arith.constant 0 : i32
    return %c0_i32, %c0_i32_0 : i32, i32
  }
  func.func @transform_5(%arg0: i32) -> (i32, i32) {
    %c0_i32 = arith.constant 0 : i32
    %c0_i32_0 = arith.constant 0 : i32
    %c0_i32_1 = arith.constant 0 : i32
    return %c0_i32, %c0_i32_0 : i32, i32
  }
  func.func @transform_6(%arg0: i32) -> (i32, i32) {
    %c0_i32 = arith.constant 0 : i32
    %c0_i32_0 = arith.constant 0 : i32
    %c0_i32_1 = arith.constant 0 : i32
    return %c0_i32, %c0_i32_0 : i32, i32
  }
  func.func @transform_7(%arg0: i32) -> (i32, i32) {
    %c0_i32 = arith.constant 0 : i32
    %c0_i32_0 = arith.constant 0 : i32
    %c0_i32_1 = arith.constant 0 : i32
    return %c0_i32, %c0_i32_0 : i32, i32
  }
  func.func @transform_8(%arg0: i32) -> (i32, i32) {
    %c0_i32 = arith.constant 0 : i32
    %c0_i32_0 = arith.constant 0 : i32
    return %arg0, %c0_i32 : i32, i32
  }
}

</mosaic_0001>

<bundles_post_ra>
// kernel: tpu_custom_call.1
= control target key start
LH: loop header
LB: loop body
LE: loop exit
PB: predicated region body
PF: predicated region fallthrough
CT: control target
= control target key end

     0   :  { %13 = vsyncpa [#allocation3], 0  ;;  %s613_s0 = inlined_call_operand.vmem [shape: bf16[2,16,5], index: 0, kind: input, shape index: {}]   ;;  %s614_s1 = inlined_call_operand.vmem [shape: s32[2,1], index: 1, kind: input, shape index: {}]   ;;  %s615_s2 = inlined_call_operand.hbm [shape: bf16[5,32], index: 2, kind: input, shape index: {}]   ;;  %s616_s3 = inlined_call_operand.vmem [shape: f32[1,32], index: 3, kind: input, shape index: {}]   ;;  %s617_s4 = inlined_call_operand.vmem [shape: bf16[32,32], index: 4, kind: input, shape index: {}]   ;;  %s618_s5 = inlined_call_operand.vmem [shape: f32[1,32], index: 5, kind: input, shape index: {}]   ;;  %s619_s6 = inlined_call_operand.vmem [shape: bf16[32,128], index: 6, kind: input, shape index: {}]   ;;  %s620_s7 = inlined_call_operand.vmem [shape: f32[1,128], index: 7, kind: input, shape index: {}]   ;;  %s621_s8 = inlined_call_operand.hbm [shape: f32[2,128], index: 8, kind: output, shape index: {}]  }
   0x1   :  { %14 = vsyncpa [#allocation4], 0  ;;  %s505_s27 = smov [#allocation2]   ;;  %s457_s9 = scalar_lea.hbm %s615_s2, 64 }
   0x2   :  { %s25_s28 = sshll.u32 %s505_s27, 4  ;;  %p458_p0 = scmp.ne.s32.totalorder %s615_s2, %s457_s9  ;;  %s26_s28 = int_to_ptr.vmem [resolvable:$true] %s25_s28 }
   0x3   :  { %p461_p1 = scmp.lt.u32.totalorder %s457_s9, %s615_s2 }
   0x5   :  { %p463_p2 = pnand %p461_p1, %p458_p0 }
   0x7   :  { %466 = shalt.err (!%p463_p2)
}
   0x8   :  { %s467_s14 = scalar_lea.vmem %s26_s28, 64  ;;  %p472_p4 = scmp.lt.s32.totalorder %s26_s28, %s26_s28 }
   0x9   :  { %p468_p3 = scmp.ne.s32.totalorder %s26_s28, %s467_s14  ;;  %p473_p5 = scmp.lt.s32.totalorder %s467_s14, %s467_s14 }
   0xb   :  { %p474_p6 = por %p473_p5, %p472_p4 }
   0xd   :  { %p475_p7 = pnand %p474_p6, %p468_p3 }
   0xf   :  { %478 = shalt.err (!%p475_p7)
}
  0x10   :  { %28 = dma.hbm_to_vmem [thread:$0]  %s615_s2, 64, %s26_s28, [#allocation3]  }
  0x11   :  { %501 = dma.done.wait [#allocation3], 64  }
  0x12   :  { %502 = vsyncadd [#allocation3], 4294967232  ;;  %vm72_vm0 = vcmask 1041408   ;;  %vm73_vm1 = vcmask 1042432   ;;  %v506_v0 = vmov 65535   ;;  %vm65_vm2 = vcmask 39936  }
  0x13   :  { %v74_v1 = vsel %vm72_vm0, 4294967295, %v506_v0  ;;  %v47_v3 = vld [vmem:[#allocation2] sm:$0x7]  ;;  %v450_v6 = vld [vmem:[%s613_s0 + $0x8] sm:$0xff]   ;;  %vm157_vm3 = vcmask 261120   ;;  %v298_v27 = vlaneseq  ;;  %v507_v28 = vmov 0  }
  0x14   :  { %v75_v2 = vsel %vm73_vm1, %v74_v1, 0  ;;  %v449_v5 = vld [vmem:[%s613_s0] sm:$0xff]   ;;  %v452_v8 = vld [vmem:[%s617_s4 + $0x8] sm:$0xff]   ;;  %447 = vset.pattern.permute.xlu0 %v507_v28  ;;  %v508_v29 = vmov 1966171168   ;;  %448 = vset.pattern.permute.xlu1 %v507_v28  ;;  %vm375_vm9 = vcmask 1041409  }
  0x15   :  { %v77_v4 = vand.u32 %v75_v2, %v47_v3  ;;  %422 = vmatprep.mubr.msk.bf16.mxu0 %vm65_vm2, %v449_v5  ;;  %v451_v7 = vld [vmem:[%s617_s4] sm:$0xff]   ;;  %v454_v25 = vld [vmem:[%s619_s6 + $0x8] sm:$0xff]   ;;  %v302_v30 = vunpack.c.l.s4 %v508_v29  ;;  %v299_v31 = vshrl.u32 %v298_v27, 7 }
  0x16   :  { %426 = vmatprep.subr.bf16.mxu1 %v451_v7  ;;  %v394_v9 = vld [vmem:[%s616_s3] ss:$0 sm:$0xff] }
  0x17   :  { %420 = vmatprep.subr.bf16.mxu0 %v77_v4  ;;  %427 = vmatpush3.bf16.msra.mxu1 %v451_v7  ;;  %v453_v24 = vld [vmem:[%s619_s6] sm:$0xff]   ;;  %v303_v33 = vunpack.c.0.s8 %v302_v30  ;;  %v325_v38 = vsub.s32 0, %v299_v31  ;;  %v300_v61 = vadd.s32 8, %v299_v31 }
  0x18   :  { %421 = vmatpush3.bf16.msra.mxu0 %v77_v4  ;;  %428 = vmatprep.subr.bf16.mxu1 %v452_v8  ;;  %v297_v26 = vld [vmem:[%s614_s1] sm:$0x3] }
  0x19   :  { %434 = vmatprep.subr.bf16.mxu0 %v453_v24  ;;  %vm359_vm4 = vcmp.gt.s32.totalorder %v297_v26, 1  ;;  %v306_v35 = vsub.s32 %v303_v33, %v299_v31  ;;  %v399_v44 = vld [vmem:[%s618_s5] ss:$0 sm:$0xff] }
  0x1a   :  { %v360_v32 = vsel %vm359_vm4, %v297_v26, 1  ;;  %v404_v60 = vld [vmem:[%s620_s7] ss:$0 sm:$0xff]  ;;  %s509_s7 = smov [#allocation5]  }
  0x1b   :  { %423 = vmatmul.mubr.msk.bf16.vlgmr.msra.gmra.mrb[0].mxu0 %vm65_vm2, %v450_v6  ;;  %429 = vmatpush3.bf16.msra.mxu1 %v452_v8  ;;  %v361_v34 = vcvt.s32.f32 %v360_v32  ;;  %v307_v36 = vrot.slane %v297_v26, %v306_v35  ;;  %s385_s30 = sshll.u32 %s509_s7, 4  ;;  %s386_s30 = int_to_ptr.vmem [resolvable:$true] %s385_s30 }
  0x1c   :  { %435 = vmatpush3.bf16.msra.mxu0 %v453_v24  ;;  %s479_s9 = scalar_lea.vmem %s386_s30, 32  ;;  %p484_p9 = scmp.lt.s32.totalorder %s386_s30, %s386_s30 }
  0x1d   :  { %436 = vmatprep.subr.bf16.mxu0 %v454_v25  ;;  %455 = vrcp.f32 %v361_v34  ;;  %v308_v37 = vcombine.high %v307_v36, %v307_v36  ;;  %v315_v40 = vrot.slane %v307_v36, %v306_v35  ;;  %p480_p8 = scmp.ne.s32.totalorder %s386_s30, %s479_s9  ;;  %p485_p10 = scmp.lt.s32.totalorder %s479_s9, %s479_s9 }
  0x1f   :  { %v322_v39 = vrot.slane %v308_v37, %v306_v35  ;;  %v326_v43 = vrot.slane %v315_v40, %v325_v38  ;;  %p486_p11 = por %p485_p10, %p484_p9 }
  0x20   :  { %437 = vmatpush3.bf16.msra.mxu0 %v454_v25 }
  0x21   :  { %v330_v41 = vrot.slane %v322_v39, %v325_v38  ;;  %p487_p12 = pnand %p486_p11, %p480_p8 }
  0x23   :  { %335 = vperm.xlu0 %447, %v330_v41  }
  0x27   :  { %v456_v42 = vpop.eup %455  ;;  %332 = vperm.xlu0 %447, %v326_v43  }
  0x28   :  { %365 = vperm.xlu1 %448, %v456_v42  }
  0xa2   :  { %v336_v59 = vpop.permute.xlu0 %335 }
  0xa3   :  { %vm339_vm5 = vcmp.lt.s32.totalorder %v299_v31, %v336_v59  ;;  %vm340_vm7 = vcmp.lt.s32.totalorder %v300_v61, %v336_v59 }
  0xa6   :  { %v333_v63 = vpop.permute.xlu0 %332 }
  0xa7   :  { %vm337_vm6 = vcmp.lt.s32.totalorder %v299_v31, %v333_v63  ;;  %vm338_vm8 = vcmp.lt.s32.totalorder %v300_v61, %v333_v63 }
  0xee   :  { %v424_v10 = vpop.f32.mrb[0].mxu0 }
  0xef   :  { %v122_v11 = vadd.f32 %v424_v10, %v394_v9  ;;  %v113_v12 = vpop.f32.mrb[1].mxu0 }
  0xf0   :  { %v114_v13 = vadd.f32 %v394_v9, %v113_v12  ;;  %v425_v14 = vpop.f32.mrb[2].mxu0 }
  0xf1   :  { %v125_v15 = vadd.f32 %v425_v14, %v394_v9  ;;  %v116_v16 = vpop.f32.mrb[3].mxu0  ;;  %v130_v18 = vmax.f32 %v122_v11, 0.0 }
  0xf2   :  { %v117_v17 = vadd.f32 %v394_v9, %v116_v16  ;;  %v128_v20 = vmax.f32 %v114_v13, 0.0 }
  0xf3   :  { %v131_v19 = vmax.f32 %v125_v15, 0.0 }
  0xf4   :  { %v129_v21 = vmax.f32 %v117_v17, 0.0 }
  0xf5   :  { %v133_v22 = vpack.c.bf16 %v131_v19, %v130_v18  ;;  %v366_v18 = vpop.permute.xlu1 %365 }
  0xf6   :  { %v132_v23 = vpack.c.bf16 %v129_v21, %v128_v20 }
  0xf8   :  { %430 = vmatprep.mubr.msk.bf16.mxu1 %vm157_vm3, %v132_v23  ;;  %v367_v23 = vrot.slane %v366_v18, 1 }
  0xf9   :  { %431 = vmatmul.mubr.msk.bf16.vlgmr.msra.gmra.mrb[0].mxu1 %vm157_vm3, %v133_v22 }
 0x1cc   :  { %v432_v45 = vpop.f32.mrb[0].mxu1 }
 0x1cd   :  { %v207_v46 = vadd.f32 %v432_v45, %v399_v44  ;;  %v198_v47 = vpop.f32.mrb[1].mxu1 }
 0x1ce   :  { %v199_v48 = vadd.f32 %v399_v44, %v198_v47  ;;  %v433_v49 = vpop.f32.mrb[2].mxu1 }
 0x1cf   :  { %v210_v50 = vadd.f32 %v433_v49, %v399_v44  ;;  %v201_v51 = vpop.f32.mrb[3].mxu1  ;;  %v215_v53 = vmax.f32 %v207_v46, 0.0 }
 0x1d0   :  { %v202_v52 = vadd.f32 %v399_v44, %v201_v51  ;;  %v213_v55 = vmax.f32 %v199_v48, 0.0 }
 0x1d1   :  { %v216_v54 = vmax.f32 %v210_v50, 0.0 }
 0x1d2   :  { %v214_v56 = vmax.f32 %v202_v52, 0.0 }
 0x1d3   :  { %v218_v57 = vpack.c.bf16 %v216_v54, %v215_v53 }
 0x1d4   :  { %v217_v58 = vpack.c.bf16 %v214_v56, %v213_v55 }
 0x1d6   :  { %438 = vmatprep.mubr.msk.bf16.mxu0 %vm157_vm3, %v217_v58 }
 0x1d7   :  { %439 = vmatmul.mubr.msk.bf16.vlgmr.msra.gmra.mrb[4].mxu0 %vm157_vm3, %v218_v57 }
 0x2aa   :  { %v440_v62 = vpop.f32.mrb[4].mxu0 }
 0x2ab   :  { %v291_v0 = vadd.f32 %v440_v62, %v404_v60  ;;  %v282_v1 = vpop.f32.mrb[5].mxu0 }
 0x2ac   :  { %v283_v2 = vadd.f32 %v404_v60, %v282_v1  ;;  %v441_v3 = vpop.f32.mrb[6].mxu0 }
 0x2ad   :  { %v294_v4 = vadd.f32 %v441_v3, %v404_v60  ;;  %v285_v5 = vpop.f32.mrb[7].mxu0  ;;  %v343_v7 = vsel %vm339_vm5, %v291_v0, 0.0 }
 0x2ae   :  { %v286_v6 = vadd.f32 %v404_v60, %v285_v5  ;;  %v341_v9 = vsel %vm337_vm6, %v283_v2, 0.0 }
 0x2af   :  { %v344_v8 = vsel %vm340_vm7, %v294_v4, 0.0 }
 0x2b0   :  { %v352_v10 = vadd.f32 %v344_v8, %v343_v7  ;;  %v342_v11 = vsel %vm338_vm8, %v286_v6, 0.0 }
 0x2b1   :  { %v345_v12 = vadd.f32 %v342_v11, %v341_v9 }
 0x2b2   :  { %v353_v13 = vrot.slane %v352_v10, 4 }
 0x2b3   :  { %v346_v14 = vrot.slane %v345_v12, 4 }
 0x2b4   :  { %v354_v15 = vadd.f32 %v353_v13, %v352_v10 }
 0x2b5   :  { %v347_v16 = vadd.f32 %v346_v14, %v345_v12 }
 0x2b6   :  { %v355_v17 = vrot.slane %v354_v15, 2 }
 0x2b7   :  { %v348_v19 = vrot.slane %v347_v16, 2 }
 0x2b8   :  { %v356_v20 = vadd.f32 %v355_v17, %v354_v15 }
 0x2b9   :  { %v349_v21 = vadd.f32 %v348_v19, %v347_v16 }
 0x2ba   :  { %v357_v22 = vrot.slane %v356_v20, 1 }
 0x2bb   :  { %v350_v24 = vrot.slane %v349_v21, 1 }
 0x2bc   :  { %v358_v25 = vadd.f32 %v357_v22, %v356_v20 }
 0x2bd   :  { %v351_v26 = vadd.f32 %v350_v24, %v349_v21 }
 0x2be   :  { %v371_v27 = vmul.f32 %v367_v23, %v358_v25 }
 0x2bf   :  { %v370_v28 = vmul.f32 %v366_v18, %v351_v26 }
 0x2c0   :  { %v374_v29 = vrot.slane %v371_v27, 7 }
 0x2c2   :  { %v376_v30 = vsel %vm375_vm9, %v374_v29, %v370_v28 }
 0x2c3   :  { %378 = vst [vmem:[#allocation5] sm:$0x3] %v376_v30 }
 0x2c4   :  { %490 = shalt.err (!%p487_p12)
}
 0x2c5   :  { %s491_s12 = scalar_lea.hbm %s621_s8, 32 }
 0x2c6   :  { %p492_p13 = scmp.ne.s32.totalorder %s621_s8, %s491_s12  ;;  %p495_p0 = scmp.lt.u32.totalorder %s491_s12, %s621_s8 }
 0x2c8   :  { %p497_p1 = pnand %p495_p0, %p492_p13 }
 0x2ca   :  { %500 = shalt.err (!%p497_p1)
}
 0x2cb   :  { %388 = dma.vmem_to_hbm [thread:$0]  %s386_s30, 32, %s621_s8, [#allocation4]  }
 0x2cc   :  { %503 = dma.done.wait [#allocation4], 32  }
 0x2cd   :  { %504 = vsyncadd [#allocation4], 4294967264 }
 0x2ce   :  { %392 = vsyncpa [#allocation3], 1 }
 0x2cf   :  { %393 = vsyncpa [#allocation4], 1 }

</bundles_post_ra>
